<compile_context>
chip_gen: v7x
topology: tpu7x:2x2x1
jax: 0.10.0
libtpu: 0.0.40
codegen_flags: <defaults>
</compile_context>

<pallas_src>
import functools

import jax
import jax.numpy as jnp
from jax import lax
from jax.experimental import pallas as pl
from jax.experimental.pallas import tpu as pltpu

EPS = 0.003
LEAKY_SLOPE = 0.01  # PyTorch F.leaky_relu default negative_slope
HIDDEN = 3          # fc1 output width (fixed by the module)

# Contract last dim of lhs with last dim of rhs  ==  lhs @ rhs.T
_NT_DIMS = (((1,), (1,)), ((), ()))


def _actor_kernel(state_ref, w1_ref, w2_ref, bias_ref, scalars_ref, out_ref,
                  *, hidden, action_dim):
    """Fused fc1+ReLU, fc2+LeakyReLU, rescale. One batch tile per grid step."""
    x = state_ref[...]                    # (TB, S)  f32
    w1 = w1_ref[...]                      # (H, S)   PyTorch layout
    w2 = w2_ref[...]                      # (A, H)   PyTorch layout
    b = bias_ref[...]                     # (1, H + A) packed biases
    b1 = b[:, :hidden]                    # (1, H)
    b2 = b[:, hidden:]                    # (1, A)

    # fc1:  state @ W1.T  (transpose folded into dimension_numbers) + ReLU
    h = lax.dot_general(x, w1, _NT_DIMS, preferred_element_type=jnp.float32) + b1
    h = jnp.maximum(h, 0.0)

    # fc2:  h @ W2.T + LeakyReLU (slope < 1  =>  max(a, slope*a))
    a = lax.dot_general(h, w2, _NT_DIMS, preferred_element_type=jnp.float32) + b2
    a = jnp.maximum(a, LEAKY_SLOPE * a)

    # (a / 2 + 0.5) * lim  ==  a * (lim/2) + (lim/2)  -- single fused affine op.
    half_lim = scalars_ref[0] * 0.5
    out_ref[...] = (a * half_lim + half_lim).astype(out_ref.dtype)


def _batch_block(batch, max_tb=1024):
    """Whole batch when small; otherwise a multiple-of-8 divisor (v7x VMEM-safe)."""
    if batch <= max_tb:
        return batch
    for tb in (1024, 512, 256, 128, 64, 32, 16, 8):
        if tb <= max_tb and batch % tb == 0:
            return tb
    return batch  # odd batch size: fall back to a single block


def actor_forward(state, w1, b1, w2, b2, action_lim):
    """state: (B, S); w1: (H, S); b1: (H,); w2: (A, H); b2: (A,). Returns (B, A)."""
    state = jnp.asarray(state, jnp.float32)
    w1 = jnp.asarray(w1, jnp.float32)
    w2 = jnp.asarray(w2, jnp.float32)
    b1 = jnp.asarray(b1, jnp.float32)
    b2 = jnp.asarray(b2, jnp.float32)

    batch, state_dim = state.shape
    hidden = w1.shape[0]
    action_dim = w2.shape[0]

    # One small VMEM buffer holding both biases (one DMA instead of two).
    bias = jnp.concatenate([b1, b2])[None, :]                      # (1, H + A)
    # action_lim as an SMEM scalar -> no Mosaic recompile per distinct value.
    scalars = jnp.asarray(action_lim, jnp.float32).reshape((1,))   # (1,)

    tb = _batch_block(batch)
    grid = (pl.cdiv(batch, tb),)

    kernel = functools.partial(_actor_kernel, hidden=hidden, action_dim=action_dim)

    return pl.pallas_call(
        kernel,
        out_shape=jax.ShapeDtypeStruct((batch, action_dim), jnp.float32),
        grid=grid,
        in_specs=[
            pl.BlockSpec((tb, state_dim), lambda i: (i, 0)),           # state tile
            pl.BlockSpec((hidden, state_dim), lambda i: (0, 0)),       # fc1.weight (PyTorch layout)
            pl.BlockSpec((action_dim, hidden), lambda i: (0, 0)),      # fc2.weight (PyTorch layout)
            pl.BlockSpec((1, hidden + action_dim), lambda i: (0, 0)),  # packed biases
            pl.BlockSpec(memory_space=pltpu.SMEM),                     # action_lim scalar
        ],
        out_specs=pl.BlockSpec((tb, action_dim), lambda i: (i, 0)),
        compiler_params=pltpu.CompilerParams(
            dimension_semantics=("parallel",)),
    )(state, w1, w2, bias, scalars)


def init_actor_params(key, state_dim, action_dim):
    """Deterministic parameter init mirroring the PyTorch module's __init__."""
    k1, k2, k3, k4 = jax.random.split(key, 4)

    # fc1.weight = fanin_init((3, state_dim)) -> fanin = size[0] = 3
    v1 = 1.0 / jnp.sqrt(float(HIDDEN))
    w1 = jax.random.uniform(k1, (HIDDEN, state_dim), jnp.float32, -v1, v1)
    # fc1.bias: PyTorch Linear default init: U(-1/sqrt(in_features), ...)
    bb1 = 1.0 / jnp.sqrt(float(state_dim))
    b1 = jax.random.uniform(k2, (HIDDEN,), jnp.float32, -bb1, bb1)

    # fc2.weight ~ U(-EPS, EPS)
    w2 = jax.random.uniform(k3, (action_dim, HIDDEN), jnp.float32, -EPS, EPS)
    # fc2.bias: PyTorch Linear default init: U(-1/sqrt(3), 1/sqrt(3))
    bb2 = 1.0 / jnp.sqrt(float(HIDDEN))
    b2 = jax.random.uniform(k4, (action_dim,), jnp.float32, -bb2, bb2)

    return w1, b1, w2, b2


def actor_reference(state, w1, b1, w2, b2, action_lim):
    """Pure-JAX reference matching PyTorch semantics."""
    h = jnp.maximum(state @ w1.T + b1, 0.0)
    a = h @ w2.T + b2
    a = jnp.where(a >= 0.0, a, LEAKY_SLOPE * a)
    return (a / 2.0 + 0.5) * action_lim


if __name__ == "__main__":
    batch = 8
    state_dim = 32
    action_dim = 4
    action_lim = 2.0

    key = jax.random.PRNGKey(0)
    k_params, k_state = jax.random.split(key)

    w1, b1, w2, b2 = init_actor_params(k_params, state_dim, action_dim)
    state = jax.random.normal(k_state, (batch, state_dim), jnp.float32)

    out = actor_forward(state, w1, b1, w2, b2, action_lim)
    out = jax.block_until_ready(out)

    ref = actor_reference(state, w1, b1, w2, b2, action_lim)
    assert out.shape == (batch, action_dim)
    assert jnp.allclose(out, ref, atol=1e-5, rtol=1e-5), "mismatch vs reference"

    print("KERNEL_OK")
</pallas_src>

<mosaic_0001>
module attributes {stable_mosaic.version = 11 : i64} {
  func.func @_actor_kernel(%arg0: i32, %arg1: memref<8x32xf32, #tpu.memory_space<vmem>>, %arg2: memref<3x32xf32, #tpu.memory_space<vmem>>, %arg3: memref<4x3xf32, #tpu.memory_space<vmem>>, %arg4: memref<1x7xf32, #tpu.memory_space<vmem>>, %arg5: memref<1xf32, #tpu.memory_space<smem>>, %arg6: memref<8x4xf32, #tpu.memory_space<vmem>>) attributes {dimension_semantics = [#tpu.dimension_semantics<parallel>], iteration_bounds = array<i64: 1>, scalar_prefetch = 0 : i64, scratch_operands = 0 : i64, tpu.core_type = #tpu.core_type<tc>, window_params = [{transform_indices = @transform_0, window_bounds = array<i64: 8, 32>}, {pipeline_mode = #tpu.pipeline_mode<synchronous>, transform_indices = @transform_1, window_bounds = array<i64: 3, 32>}, {pipeline_mode = #tpu.pipeline_mode<synchronous>, transform_indices = @transform_2, window_bounds = array<i64: 4, 3>}, {pipeline_mode = #tpu.pipeline_mode<synchronous>, transform_indices = @transform_3, window_bounds = array<i64: 1, 7>}, {transform_indices = @transform_4, window_bounds = array<i64: 1>}, {transform_indices = @transform_5, window_bounds = array<i64: 8, 4>}]} {
    %c0 = arith.constant 0 : index
    %c0_0 = arith.constant 0 : index
    %0 = vector.load %arg1[%c0, %c0_0] : memref<8x32xf32, #tpu.memory_space<vmem>>, vector<8x32xf32>
    %c0_1 = arith.constant 0 : index
    %c0_2 = arith.constant 0 : index
    %1 = vector.load %arg2[%c0_1, %c0_2] : memref<3x32xf32, #tpu.memory_space<vmem>>, vector<3x32xf32>
    %c0_3 = arith.constant 0 : index
    %c0_4 = arith.constant 0 : index
    %2 = vector.load %arg3[%c0_3, %c0_4] : memref<4x3xf32, #tpu.memory_space<vmem>>, vector<4x3xf32>
    %c0_5 = arith.constant 0 : index
    %c0_6 = arith.constant 0 : index
    %3 = vector.load %arg4[%c0_5, %c0_6] : memref<1x7xf32, #tpu.memory_space<vmem>>, vector<1x7xf32>
    %4 = vector.extract_strided_slice %3 {offsets = [0, 0], sizes = [1, 3], strides = [1, 1]} : vector<1x7xf32> to vector<1x3xf32>
    %5 = vector.extract_strided_slice %3 {offsets = [0, 3], sizes = [1, 4], strides = [1, 1]} : vector<1x7xf32> to vector<1x4xf32>
    %cst = arith.constant dense<0.000000e+00> : vector<8x3xf32>
    %6 = tpu.matmul %0, %1, %cst {dimension_numbers = #tpu.dot_dimension_numbers<[1], [1], [0], [0], [0, 0, 1, 0], [], []>} : vector<8x32xf32>, vector<3x32xf32>, vector<8x3xf32> -> vector<8x3xf32>
    %7 = vector.broadcast %4 : vector<1x3xf32> to vector<8x3xf32>
    %8 = arith.addf %6, %7 : vector<8x3xf32>
    %cst_7 = arith.constant 0.000000e+00 : f32
    %9 = vector.broadcast %cst_7 : f32 to vector<8x3xf32>
    %10 = arith.maximumf %8, %9 : vector<8x3xf32>
    %cst_8 = arith.constant dense<0.000000e+00> : vector<8x4xf32>
    %11 = tpu.matmul %10, %2, %cst_8 {dimension_numbers = #tpu.dot_dimension_numbers<[1], [1], [0], [0], [0, 0, 1, 0], [], []>} : vector<8x3xf32>, vector<4x3xf32>, vector<8x4xf32> -> vector<8x4xf32>
    %12 = vector.broadcast %5 : vector<1x4xf32> to vector<8x4xf32>
    %13 = arith.addf %11, %12 : vector<8x4xf32>
    %cst_9 = arith.constant 0.00999999977 : f32
    %14 = vector.broadcast %cst_9 : f32 to vector<8x4xf32>
    %15 = arith.mulf %14, %13 : vector<8x4xf32>
    %16 = arith.maximumf %13, %15 : vector<8x4xf32>
    %c0_10 = arith.constant 0 : index
    %17 = memref.load %arg5[%c0_10] : memref<1xf32, #tpu.memory_space<smem>>
    %cst_11 = arith.constant 5.000000e-01 : f32
    %18 = arith.mulf %17, %cst_11 : f32
    %19 = vector.broadcast %18 : f32 to vector<8x4xf32>
    %20 = arith.mulf %16, %19 : vector<8x4xf32>
    %21 = vector.broadcast %18 : f32 to vector<8x4xf32>
    %22 = arith.addf %20, %21 : vector<8x4xf32>
    %c0_12 = arith.constant 0 : index
    %c0_13 = arith.constant 0 : index
    %23 = vector.load %arg6[%c0_12, %c0_13] : memref<8x4xf32, #tpu.memory_space<vmem>>, vector<8x4xf32>
    tpu.vector_store %arg6[%c0_12, %c0_13], %22 {strides = array<i32>} : memref<8x4xf32, #tpu.memory_space<vmem>>, vector<8x4xf32>,
    return
  }
  func.func @transform_0(%arg0: i32) -> (i32, i32) {
    %c0_i32 = arith.constant 0 : i32
    %c0_i32_0 = arith.constant 0 : i32
    return %arg0, %c0_i32 : i32, i32
  }
  func.func @transform_1(%arg0: i32) -> (i32, i32) {
    %c0_i32 = arith.constant 0 : i32
    %c0_i32_0 = arith.constant 0 : i32
    %c0_i32_1 = arith.constant 0 : i32
    return %c0_i32, %c0_i32_0 : i32, i32
  }
  func.func @transform_2(%arg0: i32) -> (i32, i32) {
    %c0_i32 = arith.constant 0 : i32
    %c0_i32_0 = arith.constant 0 : i32
    %c0_i32_1 = arith.constant 0 : i32
    return %c0_i32, %c0_i32_0 : i32, i32
  }
  func.func @transform_3(%arg0: i32) -> (i32, i32) {
    %c0_i32 = arith.constant 0 : i32
    %c0_i32_0 = arith.constant 0 : i32
    %c0_i32_1 = arith.constant 0 : i32
    return %c0_i32, %c0_i32_0 : i32, i32
  }
  func.func @transform_4(%arg0: i32) -> i32 {
    %c0_i32 = arith.constant 0 : i32
    %c0_i32_0 = arith.constant 0 : i32
    return %c0_i32 : i32
  }
  func.func @transform_5(%arg0: i32) -> (i32, i32) {
    %c0_i32 = arith.constant 0 : i32
    %c0_i32_0 = arith.constant 0 : i32
    return %arg0, %c0_i32 : i32, i32
  }
}

</mosaic_0001>

<bundles_post_ra>
// kernel: tpu_custom_call.1
= control target key start
LH: loop header
LB: loop body
LE: loop exit
PB: predicated region body
PF: predicated region fallthrough
CT: control target
= control target key end

     0   :  { %11 = vsyncpa [#allocation4], 0  ;;  %s262_s18 = smov [#allocation3]   ;;  %s323_s0 = inlined_call_operand.hbm [shape: f32[8,32], index: 0, kind: input, shape index: {}]   ;;  %s324_s1 = inlined_call_operand.vmem [shape: f32[3,32], index: 1, kind: input, shape index: {}]   ;;  %s325_s2 = inlined_call_operand.vmem [shape: f32[4,3], index: 2, kind: input, shape index: {}]   ;;  %s326_s3 = inlined_call_operand.vmem [shape: f32[1,7], index: 3, kind: input, shape index: {}]   ;;  %s327_s4 = inlined_call_operand.<no memory space> [shape: f32[1], index: 4, kind: input, shape index: {}]   ;;  %s328_s5 = inlined_call_operand.vmem [shape: f32[8,4], index: 5, kind: output, shape index: {}]  }
   0x1   :  { %s18_s19 = sshll.u32 %s262_s18, 4  ;;  %s238_s22 = scalar_lea.hbm %s323_s0, 128  ;;  %s19_s19 = int_to_ptr.vmem [resolvable:$true] %s18_s19 }
   0x2   :  { %p239_p0 = scmp.ne.s32.totalorder %s323_s0, %s238_s22  ;;  %p242_p1 = scmp.lt.u32.totalorder %s238_s22, %s323_s0 }
   0x4   :  { %p244_p2 = pnand %p242_p1, %p239_p0 }
   0x6   :  { %247 = shalt.err (!%p244_p2)
}
   0x7   :  { %s248_s27 = scalar_lea.vmem %s19_s19, 128  ;;  %p253_p4 = scmp.lt.s32.totalorder %s19_s19, %s19_s19 }
   0x8   :  { %p249_p3 = scmp.ne.s32.totalorder %s19_s19, %s248_s27  ;;  %p254_p5 = scmp.lt.s32.totalorder %s248_s27, %s248_s27 }
   0xa   :  { %p255_p6 = por %p254_p5, %p253_p4 }
   0xc   :  { %p256_p7 = pnand %p255_p6, %p249_p3 }
   0xe   :  { %259 = shalt.err (!%p256_p7)
}
   0xf   :  { %21 = dma.hbm_to_vmem [thread:$0]  %s323_s0, 128, %s19_s19, [#allocation4]  }
  0x10   :  { %260 = dma.done.wait [#allocation4], 128  }
  0x11   :  { %261 = vsyncadd [#allocation4], 4294967168  ;;  %v263_v0 = vmov 0.0   ;;  %vm264_vm0 = vmmov 0   ;;  %vm43_vm1 = vcmask 261120   ;;  %v33_v2 = vld [vmem:[#allocation3] sm:$0xff] }
  0x12   :  { %224 = vmatprep.subr.mxu0 %v263_v0  ;;  %226 = vmatprep.mubr.msk.f32.mxu0 %vm264_vm0, %v263_v0  ;;  %v34_v1 = vld [vmem:[%s324_s1] sm:$0x7]  ;;  %vm124_vm2 = vcmask 23552   ;;  %s265_s10 = smov 125   ;;  %s204_s12 = smul.f32 0.5, %s327_s4  ;;  %vm208_vm3 = vcmask 31744  }
  0x13   :  { %229 = vmatprep.subr.mxu1 %v263_v0  ;;  %231 = vmatprep.mubr.msk.f32.mxu1 %vm264_vm0, %v263_v0  ;;  %v35_v3 = vld [vmem:[%s325_s2] sm:$0xf] }
  0x14   :  { %225 = vmatpush3.xpose.msk.msra.mxu0 %vm43_vm1, %v34_v1  ;;  %230 = vmatpush3.xpose.msk.msra.mxu1 %vm124_vm2, %v35_v3  ;;  %v215_v4 = vld [vmem:[%s326_s3] ss:$0 sm:$0xff]  ;;  %v205_v14 = vstv %s204_s12 }
  0x15   :  { %121 = vrot.lane.b32.xlu0 %v215_v4, %s265_s10 }
  0x17   :  { %227 = vmatmul.mubr.msk.f32.vlgmr.msra.gmra.mrb[0].mxu0 %vm43_vm1, %v33_v2 }
  0x87   :  { %v122_v9 = vpop.permute.xlu0 %121 }
  0xea   :  { %v116_v5 = vpop.f32.mrb[0].mxu0 }
  0xeb   :  { %v117_v6 = vadd.f32 %v215_v4, %v116_v5  ;;  %v228_v7 = vpop.f32.mrb[1].mxu0 }
  0xed   :  { %v120_v8 = vmax.f32 %v117_v6, 0.0 }
  0xef   :  { %232 = vmatmul.mubr.msk.f32.vlgmr.msra.gmra.mrb[0].mxu1 %vm124_vm2, %v120_v8 }
 0x1c2   :  { %v197_v10 = vpop.f32.mrb[0].mxu1 }
 0x1c3   :  { %v198_v11 = vadd.f32 %v197_v10, %v122_v9  ;;  %v233_v12 = vpop.f32.mrb[1].mxu1 }
 0x1c5   :  { %v201_v13 = vmul.f32 0.01, %v198_v11 }
 0x1c7   :  { %v202_v15 = vmax.f32 %v198_v11, %v201_v13 }
 0x1c9   :  { %v206_v16 = vmul.f32 %v205_v14, %v202_v15 }
 0x1cb   :  { %v207_v17 = vadd.f32 %v206_v16, %v205_v14 }
 0x1cd   :  { %209 = vst.msk [vmem:[%s328_s5] sm:$0xff] %vm208_vm3, %v207_v17 }
 0x1ce   :  { %214 = vsyncpa [#allocation4], 1 }

</bundles_post_ra>
